<compile_context>
chip_gen: v5e
topology: v5e:2x2
jax: 0.10.0
libtpu: 0.0.40
codegen_flags: <defaults>
</compile_context>

<pallas_src>
import functools

import jax
import jax.numpy as jnp
from jax.experimental import pallas as pl
from jax.experimental.pallas import tpu as pltpu

BN_EPS = 1e-5
LANE = 128


def _round_up(v, m):
    return (v + m - 1) // m * m


def _vmem_capacity_bytes():
    """Physical VMEM per TensorCore; conservative (v7x) fallback."""
    try:
        info = pltpu.get_tpu_info()
        cap = getattr(info, "vmem_capacity_bytes", None)
        if cap:
            return int(cap)
    except Exception:
        pass
    return 64 * 1024 * 1024


def mlp_kernel(x_ref, w1t_ref, gamma_ref, beta_ref, w2t_ref, o_ref,
               sum_h_ref, sum_h2_ref, pilot_ref, scale_ref, shift_ref,
               *h_cache_refs, inv_n, n_rows, cache_h):
    p = pl.program_id(0)   # 0 = BN-statistics pass, 1 = apply pass
    i = pl.program_id(1)   # batch-tile index

    @pl.when(p == 0)
    def _stats_pass():
        # bf16 x bf16 -> f32 accumulation on the MXU.
        h = jnp.dot(x_ref[...], w1t_ref[...],
                    preferred_element_type=jnp.float32)        # (tile_n, Hp)

        @pl.when(i == 0)
        def _init():
            sum_h_ref[...] = jnp.zeros_like(sum_h_ref)
            sum_h2_ref[...] = jnp.zeros_like(sum_h2_ref)
            # Pilot mean from the first tile: centering the running sums on it
            # avoids E[h^2]-mu^2 cancellation in f32.
            pilot_ref[...] = (jnp.sum(h, axis=0, keepdims=True)
                              * (1.0 / h.shape[0]))

        # Mask padded batch rows so they contribute exactly zero to the sums.
        row = jax.lax.broadcasted_iota(jnp.int32, (h.shape[0], 1), 0) + i * h.shape[0]
        hc = jnp.where(row < n_rows, h - pilot_ref[...], 0.0)
        sum_h_ref[...] += jnp.sum(hc, axis=0, keepdims=True)
        sum_h2_ref[...] += jnp.sum(hc * hc, axis=0, keepdims=True)

        if cache_h:
            # Single-tile case: keep h resident so pass 1 skips matmul-1.
            h_cache_refs[0][...] = h

    @pl.when(jnp.logical_and(p == 1, i == 0))
    def _finalize_stats():
        mu_c = sum_h_ref[...] * inv_n                       # mean of (h - pilot)
        var = jnp.maximum(sum_h2_ref[...] * inv_n - mu_c * mu_c, 0.0)
        scale = gamma_ref[...] * jax.lax.rsqrt(var + BN_EPS)  # gamma folded in
        scale_ref[...] = scale
        shift_ref[...] = beta_ref[...] - (pilot_ref[...] + mu_c) * scale

    @pl.when(p == 1)
    def _apply():
        if cache_h:
            h = h_cache_refs[0][...]
        else:
            h = jnp.dot(x_ref[...], w1t_ref[...],
                        preferred_element_type=jnp.float32)   # (tile_n, Hp)
        # BN + ReLU as a single per-feature mul+add followed by max.
        h_act = jnp.maximum(h * scale_ref[...] + shift_ref[...], 0.0)
        o_ref[...] = jnp.dot(h_act.astype(jnp.bfloat16), w2t_ref[...],
                             preferred_element_type=jnp.float32)


def prepare_params(w1, gamma, beta, w2):
    """Pad/transpose the parameters once (per parameter set, not per call)."""
    hdim, d_in = w1.shape
    d_out = w2.shape[0]
    d_in_p = _round_up(d_in, LANE)
    h_p = _round_up(hdim, LANE)
    d_out_p = _round_up(d_out, LANE)

    w1t_p = jnp.zeros((d_in_p, h_p), jnp.bfloat16).at[:d_in, :hdim].set(
        jnp.asarray(w1, jnp.bfloat16).T)
    w2t_p = jnp.zeros((h_p, d_out_p), jnp.bfloat16).at[:hdim, :d_out].set(
        jnp.asarray(w2, jnp.bfloat16).T)
    gamma_p = jnp.zeros((1, h_p), jnp.float32).at[0, :hdim].set(
        jnp.asarray(gamma, jnp.float32))
    beta_p = jnp.zeros((1, h_p), jnp.float32).at[0, :hdim].set(
        jnp.asarray(beta, jnp.float32))

    return dict(w1t=w1t_p, w2t=w2t_p, gamma=gamma_p, beta=beta_p,
                d_in=d_in, hidden=hdim, d_out=d_out)


def mlp_forward(x, params, *, tile_n=None):
    """x: (N, D_in); params: output of prepare_params."""
    n, d_in = x.shape
    assert d_in == params["d_in"]
    d_in_p, h_p = params["w1t"].shape
    d_out_p = params["w2t"].shape[1]
    d_out = params["d_out"]

    # --- per-chip VMEM budget --------------------------------------------
    vmem_cap = _vmem_capacity_bytes()
    vmem_limit = min(96 * 1024 * 1024, vmem_cap * 3 // 4)
    budget = vmem_limit - (4 << 20)          # headroom for compiler scratch

    weights_bytes = (d_in_p * h_p + h_p * d_out_p) * 2 + 2 * h_p * 4  # single-buffered
    scratch_bytes = 5 * h_p * 4

    def step_bytes(t, cache):
        io = t * d_in_p * 2 * 2 + t * d_out_p * 4 * 2      # 2x-buffered x + out
        inter = 2 * t * h_p * 4                            # f32 h intermediate + temps
        cache_b = t * h_p * 4 if cache else 0
        return weights_bytes + scratch_bytes + io + inter + cache_b

    if tile_n is None:
        cap_rows = max(_round_up(n, 8), 8)
        tile_n = min(128, cap_rows)
        for cand in (1024, 512, 256):                      # biggest tile that fits
            t = min(cand, cap_rows)
            if step_bytes(t, False) <= budget:
                tile_n = t
                break

    n_p = _round_up(n, tile_n)
    nt = n_p // tile_n
    cache_h = (nt == 1) and step_bytes(tile_n, True) <= budget

    # --- lane-dense bf16 input (skip the pad pass when already aligned) ---
    if n == n_p and d_in == d_in_p:
        x_p = jnp.asarray(x, jnp.bfloat16)
    else:
        x_p = jnp.zeros((n_p, d_in_p), jnp.bfloat16).at[:n, :d_in].set(
            jnp.asarray(x, jnp.bfloat16))

    kernel = functools.partial(mlp_kernel, inv_n=1.0 / n, n_rows=n,
                               cache_h=cache_h)

    const_buf = pl.Buffered(buffer_count=1)   # VMEM-resident, never re-fetched
    scratch_shapes = [pltpu.VMEM((1, h_p), jnp.float32)] * 5  # sums, pilot, scale, shift
    if cache_h:
        scratch_shapes = scratch_shapes + [pltpu.VMEM((tile_n, h_p), jnp.float32)]

    grid_spec = pltpu.PrefetchScalarGridSpec(
        num_scalar_prefetch=0,
        grid=(2, nt),   # (pass, batch-tile): pass 0 = stats, pass 1 = apply
        in_specs=[
            pl.BlockSpec((tile_n, d_in_p), lambda p, i: (i, 0)),
            pl.BlockSpec((d_in_p, h_p), lambda p, i: (0, 0),
                         pipeline_mode=const_buf),          # W1^T
            pl.BlockSpec((1, h_p), lambda p, i: (0, 0),
                         pipeline_mode=const_buf),           # gamma
            pl.BlockSpec((1, h_p), lambda p, i: (0, 0),
                         pipeline_mode=const_buf),           # beta
            pl.BlockSpec((h_p, d_out_p), lambda p, i: (0, 0),
                         pipeline_mode=const_buf),           # W2^T
        ],
        # Pass 0 pins the output at block 0 (no garbage write-backs); pass 1
        # walks the batch tiles normally.
        out_specs=pl.BlockSpec((tile_n, d_out_p), lambda p, i: (p * i, 0)),
        scratch_shapes=scratch_shapes,
    )

    out_p = pl.pallas_call(
        kernel,
        grid_spec=grid_spec,
        out_shape=jax.ShapeDtypeStruct((n_p, d_out_p), jnp.float32),
        compiler_params=pltpu.CompilerParams(
            # Both axes sequential: BN stats are shared across batch tiles and
            # pass 0 must fully precede pass 1.
            dimension_semantics=("arbitrary", "arbitrary"),
            vmem_limit_bytes=vmem_limit,
        ),
    )(x_p, params["w1t"], params["gamma"], params["beta"], params["w2t"])

    if n == n_p and d_out == d_out_p:
        return out_p
    return out_p[:n, :d_out]


def mlp_reference(x, w1, gamma, beta, w2):
    h = x @ w1.T
    mu = h.mean(axis=0, keepdims=True)
    var = ((h - mu) ** 2).mean(axis=0, keepdims=True)
    h = (h - mu) / jnp.sqrt(var + BN_EPS) * gamma + beta
    h = jnp.maximum(h, 0.0)
    return h @ w2.T


if __name__ == "__main__":
    # Shapes implied by the module: 2-D input (N, input_dim).
    N, INPUT_DIM, HIDDEN_DIM, OUTPUT_DIM = 8, 16, 32, 16

    key = jax.random.PRNGKey(0)
    kx, k1, k2 = jax.random.split(key, 3)

    x = jax.random.normal(kx, (N, INPUT_DIM), dtype=jnp.float32)

    # nn.Linear weight shapes: (out_features, in_features), no bias.
    w1 = jax.random.normal(k1, (HIDDEN_DIM, INPUT_DIM), dtype=jnp.float32) * 0.1
    w2 = jax.random.normal(k2, (OUTPUT_DIM, HIDDEN_DIM), dtype=jnp.float32) * 0.1
    gamma = jnp.ones((HIDDEN_DIM,), dtype=jnp.float32)   # BatchNorm1d weight
    beta = jnp.zeros((HIDDEN_DIM,), dtype=jnp.float32)   # BatchNorm1d bias

    params = prepare_params(w1, gamma, beta, w2)
    out = mlp_forward(x, params)
    out = jax.block_until_ready(out)

    ref = mlp_reference(x, w1, gamma, beta, w2)
    assert out.shape == (N, OUTPUT_DIM)
    # Matmul inputs are bf16 (f32 accumulation) -> ~0.4% relative quantization
    # error; tolerance relaxed accordingly.
    assert jnp.allclose(out, ref, atol=5e-2, rtol=5e-2), (
        float(jnp.max(jnp.abs(out - ref))))

    print("KERNEL_OK")
</pallas_src>

<mosaic_0001>
module attributes {stable_mosaic.version = 11 : i64} {
  func.func @mlp_kernel(%arg0: i32, %arg1: i32, %arg2: memref<8x128xbf16, #tpu.memory_space<vmem>>, %arg3: memref<128x128xbf16, #tpu.memory_space<vmem>>, %arg4: memref<1x128xf32, #tpu.memory_space<vmem>>, %arg5: memref<1x128xf32, #tpu.memory_space<vmem>>, %arg6: memref<128x128xbf16, #tpu.memory_space<vmem>>, %arg7: memref<8x128xf32, #tpu.memory_space<vmem>>, %arg8: memref<1x128xf32, #tpu.memory_space<vmem>>, %arg9: memref<1x128xf32, #tpu.memory_space<vmem>>, %arg10: memref<1x128xf32, #tpu.memory_space<vmem>>, %arg11: memref<1x128xf32, #tpu.memory_space<vmem>>, %arg12: memref<1x128xf32, #tpu.memory_space<vmem>>, %arg13: memref<8x128xf32, #tpu.memory_space<vmem>>) attributes {dimension_semantics = [#tpu.dimension_semantics<arbitrary>, #tpu.dimension_semantics<arbitrary>], iteration_bounds = array<i64: 2, 1>, scalar_prefetch = 0 : i64, scratch_operands = 6 : i64, tpu.core_type = #tpu.core_type<tc>, window_params = [{transform_indices = @transform_0, window_bounds = array<i64: 8, 128>}, {pipeline_mode = #tpu.pipeline_mode<synchronous>, transform_indices = @transform_1, window_bounds = array<i64: 128, 128>}, {pipeline_mode = #tpu.pipeline_mode<synchronous>, transform_indices = @transform_2, window_bounds = array<i64: 1, 128>}, {pipeline_mode = #tpu.pipeline_mode<synchronous>, transform_indices = @transform_3, window_bounds = array<i64: 1, 128>}, {pipeline_mode = #tpu.pipeline_mode<synchronous>, transform_indices = @transform_4, window_bounds = array<i64: 128, 128>}, {transform_indices = @transform_5, window_bounds = array<i64: 8, 128>}]} {
    %c0_i32 = arith.constant 0 : i32
    %0 = arith.cmpi eq, %arg0, %c0_i32 : i32
    %1 = arith.extui %0 : i1 to i32
    %c0_i32_0 = arith.constant 0 : i32
    %2 = arith.cmpi ne, %1, %c0_i32_0 : i32
    scf.if %2 {
      %c0 = arith.constant 0 : index
      %c0_5 = arith.constant 0 : index
      %11 = vector.load %arg2[%c0, %c0_5] : memref<8x128xbf16, #tpu.memory_space<vmem>>, vector<8x128xbf16>
      %c0_6 = arith.constant 0 : index
      %c0_7 = arith.constant 0 : index
      %12 = vector.load %arg3[%c0_6, %c0_7] : memref<128x128xbf16, #tpu.memory_space<vmem>>, vector<128x128xbf16>
      %cst = arith.constant dense<0.000000e+00> : vector<8x128xf32>
      %13 = tpu.matmul %11, %12, %cst {dimension_numbers = #tpu.dot_dimension_numbers<[1], [0], [0], [1], [0, 0, 1, 1], [], []>} : vector<8x128xbf16>, vector<128x128xbf16>, vector<8x128xf32> -> vector<8x128xf32>
      %c0_i32_8 = arith.constant 0 : i32
      %14 = arith.cmpi eq, %arg1, %c0_i32_8 : i32
      %15 = arith.extui %14 : i1 to i32
      %c0_i32_9 = arith.constant 0 : i32
      %16 = arith.cmpi ne, %15, %c0_i32_9 : i32
      scf.if %16 {
        %cst_26 = arith.constant 0.000000e+00 : f32
        %42 = vector.broadcast %cst_26 : f32 to vector<1x128xf32>
        %c0_27 = arith.constant 0 : index
        %c0_28 = arith.constant 0 : index
        %43 = vector.load %arg8[%c0_27, %c0_28] : memref<1x128xf32, #tpu.memory_space<vmem>>, vector<1x128xf32>
        tpu.vector_store %arg8[%c0_27, %c0_28], %42 {strides = array<i32>} : memref<1x128xf32, #tpu.memory_space<vmem>>, vector<1x128xf32>,
        %cst_29 = arith.constant 0.000000e+00 : f32
        %44 = vector.broadcast %cst_29 : f32 to vector<1x128xf32>
        %c0_30 = arith.constant 0 : index
        %c0_31 = arith.constant 0 : index
        %45 = vector.load %arg9[%c0_30, %c0_31] : memref<1x128xf32, #tpu.memory_space<vmem>>, vector<1x128xf32>
        tpu.vector_store %arg9[%c0_30, %c0_31], %44 {strides = array<i32>} : memref<1x128xf32, #tpu.memory_space<vmem>>, vector<1x128xf32>,
        %cst_32 = arith.constant dense<0.000000e+00> : vector<128xf32>
        %46 = vector.multi_reduction <add>, %13, %cst_32 [0] : vector<8x128xf32> to vector<128xf32>
        %47 = vector.shape_cast %46 : vector<128xf32> to vector<1x128xf32>
        %cst_33 = arith.constant 1.250000e-01 : f32
        %48 = vector.broadcast %cst_33 : f32 to vector<1x128xf32>
        %49 = arith.mulf %47, %48 : vector<1x128xf32>
        %c0_34 = arith.constant 0 : index
        %c0_35 = arith.constant 0 : index
        %50 = vector.load %arg10[%c0_34, %c0_35] : memref<1x128xf32, #tpu.memory_space<vmem>>, vector<1x128xf32>
        tpu.vector_store %arg10[%c0_34, %c0_35], %49 {strides = array<i32>} : memref<1x128xf32, #tpu.memory_space<vmem>>, vector<1x128xf32>,
      } else {
      }
      %17 = tpu.iota {dimensions = array<i32: 0>} : vector<8x1xi32>
      %c8_i32 = arith.constant 8 : i32
      %18 = arith.muli %arg1, %c8_i32 : i32
      %19 = vector.broadcast %18 : i32 to vector<8x1xi32>
      %20 = arith.addi %17, %19 : vector<8x1xi32>
      %c8_i32_10 = arith.constant 8 : i32
      %21 = vector.broadcast %c8_i32_10 : i32 to vector<8x1xi32>
      %22 = arith.cmpi slt, %20, %21 : vector<8x1xi32>
      %c0_11 = arith.constant 0 : index
      %c0_12 = arith.constant 0 : index
      %23 = vector.load %arg10[%c0_11, %c0_12] : memref<1x128xf32, #tpu.memory_space<vmem>>, vector<1x128xf32>
      %24 = vector.broadcast %23 : vector<1x128xf32> to vector<8x128xf32>
      %25 = arith.subf %13, %24 : vector<8x128xf32>
      %cst_13 = arith.constant 0.000000e+00 : f32
      %26 = vector.shape_cast %22 : vector<8x1xi1> to vector<8x1xi1>
      %27 = vector.broadcast %26 : vector<8x1xi1> to vector<8x128xi1>
      %28 = vector.broadcast %cst_13 : f32 to vector<8x128xf32>
      %29 = arith.select %27, %25, %28 : vector<8x128xi1>, vector<8x128xf32>
      %c0_14 = arith.constant 0 : index
      %c0_15 = arith.constant 0 : index
      %30 = vector.load %arg8[%c0_14, %c0_15] : memref<1x128xf32, #tpu.memory_space<vmem>>, vector<1x128xf32>
      %cst_16 = arith.constant dense<0.000000e+00> : vector<128xf32>
      %31 = vector.multi_reduction <add>, %29, %cst_16 [0] : vector<8x128xf32> to vector<128xf32>
      %32 = vector.shape_cast %31 : vector<128xf32> to vector<1x128xf32>
      %33 = arith.addf %30, %32 : vector<1x128xf32>
      %c0_17 = arith.constant 0 : index
      %c0_18 = arith.constant 0 : index
      %34 = vector.load %arg8[%c0_17, %c0_18] : memref<1x128xf32, #tpu.memory_space<vmem>>, vector<1x128xf32>
      tpu.vector_store %arg8[%c0_17, %c0_18], %33 {strides = array<i32>} : memref<1x128xf32, #tpu.memory_space<vmem>>, vector<1x128xf32>,
      %c0_19 = arith.constant 0 : index
      %c0_20 = arith.constant 0 : index
      %35 = vector.load %arg9[%c0_19, %c0_20] : memref<1x128xf32, #tpu.memory_space<vmem>>, vector<1x128xf32>
      %36 = arith.mulf %29, %29 : vector<8x128xf32>
      %cst_21 = arith.constant dense<0.000000e+00> : vector<128xf32>
      %37 = vector.multi_reduction <add>, %36, %cst_21 [0] : vector<8x128xf32> to vector<128xf32>
      %38 = vector.shape_cast %37 : vector<128xf32> to vector<1x128xf32>
      %39 = arith.addf %35, %38 : vector<1x128xf32>
      %c0_22 = arith.constant 0 : index
      %c0_23 = arith.constant 0 : index
      %40 = vector.load %arg9[%c0_22, %c0_23] : memref<1x128xf32, #tpu.memory_space<vmem>>, vector<1x128xf32>
      tpu.vector_store %arg9[%c0_22, %c0_23], %39 {strides = array<i32>} : memref<1x128xf32, #tpu.memory_space<vmem>>, vector<1x128xf32>,
      %c0_24 = arith.constant 0 : index
      %c0_25 = arith.constant 0 : index
      %41 = vector.load %arg13[%c0_24, %c0_25] : memref<8x128xf32, #tpu.memory_space<vmem>>, vector<8x128xf32>
      tpu.vector_store %arg13[%c0_24, %c0_25], %13 {strides = array<i32>} : memref<8x128xf32, #tpu.memory_space<vmem>>, vector<8x128xf32>,
    } else {
    }
    %c1_i32 = arith.constant 1 : i32
    %3 = arith.cmpi eq, %arg0, %c1_i32 : i32
    %c0_i32_1 = arith.constant 0 : i32
    %4 = arith.cmpi eq, %arg1, %c0_i32_1 : i32
    %5 = arith.andi %3, %4 : i1
    %6 = arith.extui %5 : i1 to i32
    %c0_i32_2 = arith.constant 0 : i32
    %7 = arith.cmpi ne, %6, %c0_i32_2 : i32
    scf.if %7 {
      %c0 = arith.constant 0 : index
      %c0_5 = arith.constant 0 : index
      %11 = vector.load %arg8[%c0, %c0_5] : memref<1x128xf32, #tpu.memory_space<vmem>>, vector<1x128xf32>
      %cst = arith.constant 1.250000e-01 : f32
      %12 = vector.broadcast %cst : f32 to vector<1x128xf32>
      %13 = arith.mulf %11, %12 : vector<1x128xf32>
      %c0_6 = arith.constant 0 : index
      %c0_7 = arith.constant 0 : index
      %14 = vector.load %arg9[%c0_6, %c0_7] : memref<1x128xf32, #tpu.memory_space<vmem>>, vector<1x128xf32>
      %cst_8 = arith.constant 1.250000e-01 : f32
      %15 = vector.broadcast %cst_8 : f32 to vector<1x128xf32>
      %16 = arith.mulf %14, %15 : vector<1x128xf32>
      %17 = arith.mulf %13, %13 : vector<1x128xf32>
      %18 = arith.subf %16, %17 : vector<1x128xf32>
      %cst_9 = arith.constant 0.000000e+00 : f32
      %19 = vector.broadcast %cst_9 : f32 to vector<1x128xf32>
      %20 = arith.maximumf %18, %19 : vector<1x128xf32>
      %c0_10 = arith.constant 0 : index
      %c0_11 = arith.constant 0 : index
      %21 = vector.load %arg4[%c0_10, %c0_11] : memref<1x128xf32, #tpu.memory_space<vmem>>, vector<1x128xf32>
      %cst_12 = arith.constant 9.99999974E-6 : f32
      %22 = vector.broadcast %cst_12 : f32 to vector<1x128xf32>
      %23 = arith.addf %20, %22 : vector<1x128xf32>
      %24 = math.rsqrt %23 : vector<1x128xf32>
      %25 = arith.mulf %21, %24 : vector<1x128xf32>
      %c0_13 = arith.constant 0 : index
      %c0_14 = arith.constant 0 : index
      %26 = vector.load %arg11[%c0_13, %c0_14] : memref<1x128xf32, #tpu.memory_space<vmem>>, vector<1x128xf32>
      tpu.vector_store %arg11[%c0_13, %c0_14], %25 {strides = array<i32>} : memref<1x128xf32, #tpu.memory_space<vmem>>, vector<1x128xf32>,
      %c0_15 = arith.constant 0 : index
      %c0_16 = arith.constant 0 : index
      %27 = vector.load %arg5[%c0_15, %c0_16] : memref<1x128xf32, #tpu.memory_space<vmem>>, vector<1x128xf32>
      %c0_17 = arith.constant 0 : index
      %c0_18 = arith.constant 0 : index
      %28 = vector.load %arg10[%c0_17, %c0_18] : memref<1x128xf32, #tpu.memory_space<vmem>>, vector<1x128xf32>
      %29 = arith.addf %28, %13 : vector<1x128xf32>
      %30 = arith.mulf %29, %25 : vector<1x128xf32>
      %31 = arith.subf %27, %30 : vector<1x128xf32>
      %c0_19 = arith.constant 0 : index
      %c0_20 = arith.constant 0 : index
      %32 = vector.load %arg12[%c0_19, %c0_20] : memref<1x128xf32, #tpu.memory_space<vmem>>, vector<1x128xf32>
      tpu.vector_store %arg12[%c0_19, %c0_20], %31 {strides = array<i32>} : memref<1x128xf32, #tpu.memory_space<vmem>>, vector<1x128xf32>,
    } else {
    }
    %c1_i32_3 = arith.constant 1 : i32
    %8 = arith.cmpi eq, %arg0, %c1_i32_3 : i32
    %9 = arith.extui %8 : i1 to i32
    %c0_i32_4 = arith.constant 0 : i32
    %10 = arith.cmpi ne, %9, %c0_i32_4 : i32
    scf.if %10 {
      %c0 = arith.constant 0 : index
      %c0_5 = arith.constant 0 : index
      %11 = vector.load %arg13[%c0, %c0_5] : memref<8x128xf32, #tpu.memory_space<vmem>>, vector<8x128xf32>
      %c0_6 = arith.constant 0 : index
      %c0_7 = arith.constant 0 : index
      %12 = vector.load %arg11[%c0_6, %c0_7] : memref<1x128xf32, #tpu.memory_space<vmem>>, vector<1x128xf32>
      %13 = vector.broadcast %12 : vector<1x128xf32> to vector<8x128xf32>
      %14 = arith.mulf %11, %13 : vector<8x128xf32>
      %c0_8 = arith.constant 0 : index
      %c0_9 = arith.constant 0 : index
      %15 = vector.load %arg12[%c0_8, %c0_9] : memref<1x128xf32, #tpu.memory_space<vmem>>, vector<1x128xf32>
      %16 = vector.broadcast %15 : vector<1x128xf32> to vector<8x128xf32>
      %17 = arith.addf %14, %16 : vector<8x128xf32>
      %cst = arith.constant 0.000000e+00 : f32
      %18 = vector.broadcast %cst : f32 to vector<8x128xf32>
      %19 = arith.maximumf %17, %18 : vector<8x128xf32>
      %20 = arith.truncf %19 : vector<8x128xf32> to vector<8x128xbf16>
      %c0_10 = arith.constant 0 : index
      %c0_11 = arith.constant 0 : index
      %21 = vector.load %arg6[%c0_10, %c0_11] : memref<128x128xbf16, #tpu.memory_space<vmem>>, vector<128x128xbf16>
      %cst_12 = arith.constant dense<0.000000e+00> : vector<8x128xf32>
      %22 = tpu.matmul %20, %21, %cst_12 {dimension_numbers = #tpu.dot_dimension_numbers<[1], [0], [0], [1], [0, 0, 1, 1], [], []>} : vector<8x128xbf16>, vector<128x128xbf16>, vector<8x128xf32> -> vector<8x128xf32>
      %c0_13 = arith.constant 0 : index
      %c0_14 = arith.constant 0 : index
      %23 = vector.load %arg7[%c0_13, %c0_14] : memref<8x128xf32, #tpu.memory_space<vmem>>, vector<8x128xf32>
      tpu.vector_store %arg7[%c0_13, %c0_14], %22 {strides = array<i32>} : memref<8x128xf32, #tpu.memory_space<vmem>>, vector<8x128xf32>,
    } else {
    }
    return
  }
  func.func @transform_0(%arg0: i32, %arg1: i32) -> (i32, i32) {
    %c0_i32 = arith.constant 0 : i32
    %c0_i32_0 = arith.constant 0 : i32
    return %arg1, %c0_i32 : i32, i32
  }
  func.func @transform_1(%arg0: i32, %arg1: i32) -> (i32, i32) {
    %c0_i32 = arith.constant 0 : i32
    %c0_i32_0 = arith.constant 0 : i32
    %c0_i32_1 = arith.constant 0 : i32
    return %c0_i32, %c0_i32_0 : i32, i32
  }
  func.func @transform_2(%arg0: i32, %arg1: i32) -> (i32, i32) {
    %c0_i32 = arith.constant 0 : i32
    %c0_i32_0 = arith.constant 0 : i32
    %c0_i32_1 = arith.constant 0 : i32
    return %c0_i32, %c0_i32_0 : i32, i32
  }
  func.func @transform_3(%arg0: i32, %arg1: i32) -> (i32, i32) {
    %c0_i32 = arith.constant 0 : i32
    %c0_i32_0 = arith.constant 0 : i32
    %c0_i32_1 = arith.constant 0 : i32
    return %c0_i32, %c0_i32_0 : i32, i32
  }
  func.func @transform_4(%arg0: i32, %arg1: i32) -> (i32, i32) {
    %c0_i32 = arith.constant 0 : i32
    %c0_i32_0 = arith.constant 0 : i32
    %c0_i32_1 = arith.constant 0 : i32
    return %c0_i32, %c0_i32_0 : i32, i32
  }
  func.func @transform_5(%arg0: i32, %arg1: i32) -> (i32, i32) {
    %0 = arith.muli %arg0, %arg1 : i32
    %c0_i32 = arith.constant 0 : i32
    %c0_i32_0 = arith.constant 0 : i32
    return %0, %c0_i32 : i32, i32
  }
}

</mosaic_0001>

<bundles_post_ra>
// kernel: tpu_custom_call.1
= control target key start
LH: loop header
LB: loop body
LE: loop exit
PB: predicated region body
PF: predicated region fallthrough
CT: control target
= control target key end

     0   :  { %10 = vsyncpa [#allocation9], 0  ;;  %s1090_s0 = inlined_call_operand.hbm [shape: bf16[8,128], index: 0, kind: input, shape index: {}]   ;;  %s1091_s1 = inlined_call_operand.hbm [shape: bf16[128,128], index: 1, kind: input, shape index: {}]   ;;  %s1092_s2 = inlined_call_operand.vmem [shape: f32[1,128], index: 2, kind: input, shape index: {}]   ;;  %s1093_s3 = inlined_call_operand.vmem [shape: f32[1,128], index: 3, kind: input, shape index: {}]   ;;  %s1094_s4 = inlined_call_operand.hbm [shape: bf16[128,128], index: 4, kind: input, shape index: {}]   ;;  %s1095_s5 = inlined_call_operand.hbm [shape: f32[8,128], index: 5, kind: output, shape index: {}]  }
   0x1   :  { %11 = vsyncpa [#allocation12], 0 }
   0x2   :  { %12 = vsyncpa [#allocation10], 0 }
   0x3   :  { %14 = vsyncpa [#allocation10 + $0x1], 0  ;;  %s999_s18 = smov 0   ;;  %s1001_s19 = smov 0  }
   0x4   :  { %s1003_s20 = smov 0  }
   0x5 LB: > { %s200_s23 = sshll.u32 %s1091_s1, 4  ;;  %s635_s24 = sadd.s32 4294967295, %s960_s20   ;;  %s960_s20 = sphi %s1003_s20, %s20_s20   ;;  %s956_s19 = sphi %s1001_s19, %s1100_s19   ;;  %s952_s18 = sphi %s999_s18, %s1099_s18   ;;  %s201_s23 = int_to_ptr.hbm [resolvable:$true] %s200_s23 }
   0x6   : > { %s636_s25 = sadd.s32 4294967294, %s960_s20   ;;  %p637_p0 = scmp.ge.s32.totalorder %s960_s20, 1 }
   0x7   : > { %p175_p1 = scmp.lt.s32.totalorder %s960_s20, 3  ;;  %p1023_p2 = scmp.eq.s32.totalorder %s635_s24, 0 }
   0x8   : > { %s962_s28 = smov [#allocation11]   ;;  %s32_s6 = sadd.s32 1, %s956_s19 }
   0x9   : > { %p1027_p3 = pnand %p637_p0, %p175_p1  ;;  %s202_s29 = sshll.u32 %s962_s28, 4  ;;  %s203_s29 = int_to_ptr.vmem [resolvable:$true] %s202_s29 }
   0xa   : > { %s963_s7 = smov 64   ;;  %s964_s8 = smov 4  }
   0xb   : > { %p749_p4 = pneg %p1027_p3  ;;  %p34_p6 = scmp.ge.s32.totalorder %s32_s6, 2 }
   0xc   : > { %s189_s11 = sshll.u32 %s1090_s0, 4  ;;  %s965_s12 = smov [#allocation8]   ;;  %s190_s11 = int_to_ptr.hbm [resolvable:$true] %s189_s11 }
   0xd   : > { %p1035_p5 = pnand %p1023_p2, %p749_p4  ;;  %s1102_s6 = smov (%p34_p6, %s32_s6), 0 }
   0xe   : > { %s191_s13 = sshll.u32 %s965_s12, 4  ;;  %s220_s16 = sshll.u32 %s1094_s4, 4  ;;  %s192_s13 = int_to_ptr.vmem [resolvable:$true] %s191_s13  ;;  %s221_s16 = int_to_ptr.hbm [resolvable:$true] %s220_s16 }
   0xf   : > { %755 = dma.hbm_to_vmem [thread:$0]  (!%p1035_p5), %s201_s23, 1024, %s203_s29, [#allocation12], %s963_s7, %s963_s7, %s964_s8  }
  0x10   : > { %752 = dma.hbm_to_vmem [thread:$0]  (!%p1035_p5), %s190_s11, 64, %s192_s13, [#allocation9]  }
  0x11   : > { %s966_s17 = smov [#allocation13]   ;;  %238 = sbr.rel (%p1027_p3) target bundleno = 448 (0x1c0), region = 40 }
  0x12   : > { %s222_s21 = sshll.u32 %s966_s17, 4  ;;  %s223_s21 = int_to_ptr.vmem [resolvable:$true] %s222_s21 }
  0x13   : > { %758 = dma.hbm_to_vmem [thread:$0]  (!%p1035_p5), %s221_s16, 1024, %s223_s21, [#allocation12], %s963_s7, %s963_s7, %s964_s8  }
  0x16   : > { %939 = dma.done.wait (%p1023_p2), [#allocation9], 64  }
  0x17   : > { %941 = vsyncadd (%p1023_p2), [#allocation9], 4294967232 }
  0x18   : > { %943 = dma.done.wait (%p1023_p2), [#allocation12], 2048  }
  0x19   : > { %945 = vsyncadd (%p1023_p2), [#allocation12], 4294965248  ;;  %p645_p7 = scmp.ne.s32.totalorder %s952_s18, 0 }
  0x1b   : > { %276 = sbr.rel (%p645_p7) target bundleno = 231 (0xe7), region = 56 }
  0x20   : > { %v723_v0 = vld [vmem:[#allocation11 + $0x38] sm:$0xff]  ;;  %v722_v1 = vld [vmem:[#allocation11 + $0x30] sm:$0xff]  ;;  %v721_v2 = vld [vmem:[#allocation11 + $0x28] sm:$0xff]  ;;  %v967_v9 = vmov 0.0  }
  0x21   : > { %342 = vmatpush.bf16.msra.mxu0 %v723_v0  ;;  %v720_v3 = vld [vmem:[#allocation11 + $0x20] sm:$0xff]  ;;  %v719_v4 = vld [vmem:[#allocation11 + $0x18] sm:$0xff]  ;;  %v718_v5 = vld [vmem:[#allocation11 + $0x10] sm:$0xff]  ;;  %359 = vst [vmem:[#allocation2] sm:$0x1] %v967_v9 }
  0x22   : > { %v717_v6 = vld [vmem:[#allocation11 + $0x8] sm:$0xff]  ;;  %v716_v7 = vld [vmem:[#allocation11] sm:$0xff]  ;;  %v277_v8 = vld [vmem:[#allocation8] sm:$0xf]  ;;  %360 = vst [vmem:[#allocation3] sm:$0x1] %v967_v9 }
  0x25   : > { %343 = vmatpush.bf16.msra.mxu0 %v722_v1 }
  0x28   : > { %v383_v31 = vld [vmem:[#allocation2] sm:$0x1] }
  0x29   : > { %344 = vmatpush.bf16.msra.mxu0 %v721_v2  ;;  %v392_v34 = vld [vmem:[#allocation3] sm:$0x1] }
  0x2d   : > { %345 = vmatpush.bf16.msra.mxu0 %v720_v3 }
  0x31   : > { %346 = vmatpush.bf16.msra.mxu0 %v719_v4 }
  0x35   : > { %347 = vmatpush.bf16.msra.mxu0 %v718_v5 }
  0x39   : > { %348 = vmatpush.bf16.msra.mxu0 %v717_v6 }
  0x3d   : > { %349 = vmatpush.bf16.msra.mxu0 %v716_v7 }
  0x40   : > { %350 = vmatmul.bf16.vlgmr.msra.gmra.mxu0 %v277_v8 }
  0xbd   : > { %v351_v10 = vpop.f32.mrf.mxu0 }
  0xbe   : > { %v361_v11 = vrot.slane %v351_v10, 4  ;;  %402 = vst [vmem:[#allocation7] sm:$0xff] %v351_v10 }
  0xc0   : > { %v362_v12 = vadd.f32 %v361_v11, %v351_v10 }
  0xc2   : > { %v363_v13 = vrot.slane %v362_v12, 2 }
  0xc4   : > { %v364_v14 = vadd.f32 %v363_v13, %v362_v12 }
  0xc5   : > { %v353_v15 = vpop.f32.mrf.mxu0 }
  0xc6   : > { %v365_v16 = vrot.slane %v364_v14, 1 }
  0xc8   : > { %v366_v17 = vadd.f32 %v365_v16, %v364_v14 }
  0xca   : > { %v367_v18 = vmul.f32 0.125, %v366_v17 }
  0xcc   : > { %368 = vst [vmem:[#allocation4] sm:$0x1] %v367_v18 }
  0xd3   : > { %v803_v19 = vld [vmem:[#allocation4] ss:$0 sm:$0xff] }
  0xd4   : > { %v379_v20 = vsub.f32 %v351_v10, %v803_v19 }
  0xd6   : > { %v384_v21 = vrot.slane %v379_v20, 4  ;;  %v393_v22 = vmul.f32 %v379_v20, %v379_v20 }
  0xd8   : > { %v385_v23 = vadd.f32 %v384_v21, %v379_v20  ;;  %v394_v24 = vrot.slane %v393_v22, 4 }
  0xda   : > { %v386_v25 = vrot.slane %v385_v23, 2  ;;  %v395_v26 = vadd.f32 %v394_v24, %v393_v22 }
  0xdc   : > { %v387_v27 = vadd.f32 %v386_v25, %v385_v23  ;;  %v396_v28 = vrot.slane %v395_v26, 2 }
  0xde   : > { %v388_v29 = vrot.slane %v387_v27, 1  ;;  %v397_v30 = vadd.f32 %v396_v28, %v395_v26 }
  0xe0   : > { %v389_v32 = vadd.f32 %v388_v29, %v387_v27  ;;  %v398_v33 = vrot.slane %v397_v30, 1 }
  0xe2   : > { %v390_v35 = vadd.f32 %v389_v32, %v383_v31  ;;  %v399_v36 = vadd.f32 %v398_v33, %v397_v30 }
  0xe4   : > { %391 = vst [vmem:[#allocation2] sm:$0x1] %v390_v35  ;;  %v400_v37 = vadd.f32 %v399_v36, %v392_v34 }
  0xe6   : > { %401 = vst [vmem:[#allocation3] sm:$0x1] %v400_v37 }
  0xe7 PF: > { %p403_p8 = scmp.eq.s32.totalorder %s952_s18, 1 }
  0xe8   : > { %v431_v51 = vld [vmem:[#allocation4] sm:$0x1] (%p403_p8)  ;;  %v416_v52 = vld [vmem:[%s1092_s2] sm:$0x1] (%p403_p8) }
  0xe9   : > { %408 = sbr.rel (!%p403_p8) target bundleno = 271 (0x10f), region = 64  ;;  %v430_v57 = vld [vmem:[%s1093_s3] sm:$0x1] (%p403_p8) }
  0xeb   : > { %v409_v38 = vld [vmem:[#allocation2] sm:$0x1] (%p403_p8) }
  0xec   : > { %v410_v40 = vmul.f32 (%p403_p8), 0.125, %v409_v38 }
  0xed   : > { %v411_v39 = vld [vmem:[#allocation3] sm:$0x1] (%p403_p8) }
  0xee   : > { %v412_v41 = vmul.f32 0.125, %v411_v39  ;;  %v413_v42 = vmul.f32 %v410_v40, %v410_v40  ;;  %v432_v54 = vadd.f32 %v431_v51, %v410_v40 }
  0xf0   : > { %v414_v43 = vsub.f32 %v412_v41, %v413_v42 }
  0xf2   : > { %v415_v44 = vmax.f32 %v414_v43, 0.0 }
  0xf4   : > { %v417_v45 = vadd.f32 1e-05, %v415_v44 }
  0xf6   : > { %804 = vrsqrt.f32 %v417_v45  ;;  %vm424_vm0 = vweird.f32 %v417_v45 }
  0xfc   : > { %v805_v46 = vpop.eup %804 }
  0xfd   : > { %v419_v47 = vmul.f32 %v805_v46, %v417_v45  ;;  %vm425_vm1 = vweird.f32 %v805_v46 }
  0xfe   : > { %vm426_vm2 = vmor %vm424_vm0, %vm425_vm1 }
  0xff   : > { %v420_v48 = vmul.f32 %v805_v46, %v419_v47 }
 0x101   : > { %v421_v49 = vmul.f32 0.5, %v420_v48 }
 0x103   : > { %v422_v50 = vsub.f32 1.5, %v421_v49 }
 0x105   : > { %v423_v53 = vmul.f32 %v805_v46, %v422_v50 }
 0x107   : > { %v427_v55 = vsel %vm426_vm2, %v805_v46, %v423_v53 }
 0x108   : > { %v428_v56 = vmul.f32 %v427_v55, %v416_v52 }
 0x10a   : > { %429 = vst [vmem:[#allocation5] sm:$0x1] %v428_v56  ;;  %v433_v58 = vmul.f32 %v432_v54, %v428_v56 }
 0x10c   : > { %v434_v59 = vsub.f32 %v430_v57, %v433_v58 }
 0x10e   : > { %435 = vst [vmem:[#allocation6] sm:$0x1] %v434_v59 }
 0x10f PF: > { %p679_p9 = scmp.ne.s32.totalorder %s952_s18, 1 }
 0x111   : > { %438 = sbr.rel (%p679_p9) target bundleno = 444 (0x1bc), region = 68 }
 0x116   : > { %v732_v60 = vld [vmem:[#allocation13 + $0x38] sm:$0xff]  ;;  %v731_v61 = vld [vmem:[#allocation13 + $0x30] sm:$0xff]  ;;  %v730_v62 = vld [vmem:[#allocation13 + $0x28] sm:$0xff] }
 0x117   : > { %516 = vmatpush.bf16.msra.mxu0 %v732_v60  ;;  %v729_v63 = vld [vmem:[#allocation13 + $0x20] sm:$0xff]  ;;  %v806_v0 = vld [vmem:[#allocation5] ss:$0 sm:$0xff]  ;;  %v728_v1 = vld [vmem:[#allocation13 + $0x18] sm:$0xff] }
 0x118   : > { %v439_v2 = vld [vmem:[#allocation7] sm:$0xff]  ;;  %v807_v4 = vld [vmem:[#allocation6] ss:$0 sm:$0xff]  ;;  %v726_v7 = vld [vmem:[#allocation13 + $0x8] sm:$0xff] }
 0x119   : > { %v444_v3 = vmul.f32 %v806_v0, %v439_v2  ;;  %v727_v5 = vld [vmem:[#allocation13 + $0x10] sm:$0xff]  ;;  %v725_v9 = vld [vmem:[#allocation13] sm:$0xff] }
 0x11b   : > { %517 = vmatpush.bf16.msra.mxu0 %v731_v61  ;;  %v449_v6 = vadd.f32 %v807_v4, %v444_v3 }
 0x11d   : > { %v450_v8 = vmax.f32 %v449_v6, 0.0 }
 0x11f   : > { %518 = vmatpush.bf16.msra.mxu0 %v730_v62  ;;  %v451_v10 = vpack.c.bf16 %v450_v8, %v450_v8 }
 0x123   : > { %519 = vmatpush.bf16.msra.mxu0 %v729_v63 }
 0x127   : > { %520 = vmatpush.bf16.msra.mxu0 %v728_v1 }
 0x12b   : > { %521 = vmatpush.bf16.msra.mxu0 %v727_v5 }
 0x12f   : > { %522 = vmatpush.bf16.msra.mxu0 %v726_v7 }
 0x133   : > { %523 = vmatpush.bf16.msra.mxu0 %v725_v9 }
 0x136   : > { %524 = vmatmul.bf16.vlgmr.msra.gmra.mxu0 %v451_v10 }
 0x1b3   : > { %v525_v11 = vpop.f32.mrf.mxu0 }
 0x1b4   : > { %529 = vst [vmem:[#allocation14] sm:$0xff] %v525_v11 }
 0x1bb   : > { %v527_v12 = vpop.f32.mrf.mxu0 }
 0x1bc PF: > { %p769_p10 = scmp.eq.s32.totalorder %s635_s24, 1  ;;  %s546_s29 = sshll.u32 %s1095_s5, 4  ;;  %s547_s29 = int_to_ptr.hbm [resolvable:$true] %s546_s29 }
 0x1bd   : > { %s968_s30 = smov [#allocation14]  }
 0x1be   : > { %s544_s7 = sshll.u32 %s968_s30, 4  ;;  %s545_s7 = int_to_ptr.vmem [resolvable:$true] %s544_s7 }
 0x1bf   : > { %746 = dma.vmem_to_hbm [thread:$0]  (%p769_p10), %s545_s7, 128, %s547_s29, [#allocation10]  }
 0x1c0 PF: > { %p770_p11 = scmp.ge.s32.totalorder %s960_s20, 2  ;;  %p771_p12 = scmp.eq.s32.totalorder %s636_s25, 1 }
 0x1c2   : > { %p760_p13 = pnand %p771_p12, %p770_p11 }
 0x1c4   : > { %p761_p0 = pneg %p760_p13 }
 0x1c6   : > { %947 = dma.done.wait (%p761_p0), [#allocation10], 128  }
 0x1c7   : > { %949 = vsyncadd (%p761_p0), [#allocation10], 4294967168  ;;  %s20_s20 = sadd.s32 1, %s960_s20   ;;  %s1099_s18 = smov %s956_s19 }
 0x1c8   : > { %p17_p1 = scmp.ge.s32.totalorder %s20_s20, 4   ;;  %s1100_s19 = smov %s1102_s6 }
 0x1ca   :  { %19 = sbr.rel (!%p17_p1) target bundleno = 5 (0x5), region = 102 }
 0x1cf   :  { %565 = vsyncpa [#allocation9], 1 }
 0x1d0   :  { %567 = vsyncpa [#allocation9 + $0x1], 1 }
 0x1d1   :  { %568 = vsyncpa [#allocation12], 1 }
 0x1d2   :  { %569 = vsyncpa [#allocation10], 1 }
 0x1d3   :  { %571 = vsyncpa [#allocation10 + $0x1], 1 }

</bundles_post_ra>
